<compile_context>
chip_gen: v5e
topology: v5e:2x2
jax: 0.10.0
libtpu: 0.0.40
codegen_flags: <defaults>
</compile_context>

<pallas_src>
import jax
import jax.numpy as jnp
from jax.experimental import pallas as pl
from jax.experimental.pallas import tpu as pltpu


# ----------------------------------------------------------------------------- kernels
def _predictor_kernel_single_k(x_ref, w_ref, b_ref, o_ref):
    # x_ref: (tm, H)  w_ref: (H, tn)  b_ref: (1, tn)  o_ref: (tm, tn)
    acc = jnp.dot(x_ref[...], w_ref[...], preferred_element_type=jnp.float32)
    o_ref[...] = (acc + b_ref[...].astype(jnp.float32)).astype(o_ref.dtype)


def _predictor_kernel_multi_k(x_ref, w_ref, b_ref, o_ref, acc_ref):
    # x_ref: (tm, tk)  w_ref: (tk, tn)  b_ref: (1, tn)  o_ref: (tm, tn)
    # acc_ref: (tm, tn) f32 scratch, K (reduction) is the last, "arbitrary" grid axis.
    k = pl.program_id(2)

    @pl.when(k == 0)
    def _init():
        acc_ref[...] = jnp.broadcast_to(b_ref[...].astype(jnp.float32), acc_ref.shape)

    acc_ref[...] += jnp.dot(x_ref[...], w_ref[...], preferred_element_type=jnp.float32)

    @pl.when(k == pl.num_programs(2) - 1)
    def _finalize():
        o_ref[...] = acc_ref[...].astype(o_ref.dtype)


# ----------------------------------------------------------------------------- helpers
def _round_up(a, b):
    return ((a + b - 1) // b) * b


def _sublane_pack(dtype):
    # Native sublane packing: 8 rows for 4-byte, 16 for 2-byte, 32 for 1-byte dtypes.
    return max(8, 32 // jnp.dtype(dtype).itemsize)


def _pick_tile(desired, total, multiple):
    """Largest multiple of `multiple` <= desired that divides round_up(total, multiple)."""
    total_pad = _round_up(total, multiple)
    t = min(_round_up(max(desired, multiple), multiple), total_pad)
    while total_pad % t != 0:
        t -= multiple
    return t


def _vmem_budget_bytes():
    # Generation-aware cap: ~48 MiB on v7x (64 MiB physical), ~96 MiB on v5e/v6e.
    try:
        cap = int(pltpu.get_tpu_info().vmem_capacity_bytes)
    except Exception:
        cap = 64 << 20  # conservative fallback (v7x per-core VMEM)
    return (cap * 3) // 4


def _vmem_needed(tm, tn, tk, single_k, xb, wb, ob, bb):
    # Double-buffered x / w / out / bias blocks (+ f32 accumulator for the 3-D path).
    n = 2 * (tm * tk * xb + tk * tn * wb + tm * tn * ob + tn * bb)
    if not single_k:
        n += tm * tn * 4
    return n


# ----------------------------------------------------------------------------- wrapper
def my_predictor_logits(hidden_states, weight, bias, *, tm=512, tn=512,
                        max_single_k_hidden=8192):
    """hidden_states: (..., H); weight: (H, V); bias: (V,) -> logits (..., V)."""
    orig_shape = hidden_states.shape
    H = orig_shape[-1]
    x = hidden_states.reshape(-1, H)
    M = x.shape[0]
    Hw, V = weight.shape
    assert Hw == H, "weight must be (hidden, vocab)"

    out_dtype = hidden_states.dtype
    xb = jnp.dtype(hidden_states.dtype).itemsize
    wb = jnp.dtype(weight.dtype).itemsize
    bb = jnp.dtype(bias.dtype).itemsize
    ob = jnp.dtype(out_dtype).itemsize

    # --- tile selection -------------------------------------------------------
    pack_m = _sublane_pack(out_dtype)
    tm = max(pack_m, (min(tm, _round_up(M, pack_m)) // pack_m) * pack_m)
    tn = _pick_tile(tn, V, 128)                       # divides round_up(V, 128)
    V_pad = _round_up(V, 128)

    single_k = H <= max_single_k_hidden
    if single_k:
        tk = H
        H_pad = H                                     # full-H block: no H padding needed
    else:
        tk = _pick_tile(512, H, 128)
        H_pad = _round_up(H, 128)

    M_pad = _round_up(M, tm)

    # Decode-sized M with a single vocab tile: split the vocab axis so
    # multi-TensorCore chips (v7x) can shard the "parallel" grid.
    if M_pad // tm == 1 and V_pad // tn == 1 and V_pad // 128 >= 2:
        tn = _pick_tile(V_pad // 2, V, 128)

    # Shrink tiles until the double-buffered working set fits the VMEM budget.
    budget = _vmem_budget_bytes()
    while (_vmem_needed(tm, tn, tk, single_k, xb, wb, ob, bb) > budget
           and (tn > 128 or tm > pack_m)):
        if tn >= tm and tn > 128:
            tn = _pick_tile(max(128, tn // 2), V, 128)
        elif tm > pack_m:
            tm = max(pack_m, ((tm // 2) // pack_m) * pack_m)
            M_pad = _round_up(M, tm)
        else:
            break

    needed = _vmem_needed(tm, tn, tk, single_k, xb, wb, ob, bb)
    vmem_limit = int(min(budget, max(2 * needed, 8 << 20)))

    # --- padding (at most 127 extra vocab cols / 127 hidden rows / tm-1 rows of x) ---
    x_p = x if (M_pad == M and H_pad == H) else jnp.pad(
        x, ((0, M_pad - M), (0, H_pad - H)))
    w_p = weight if (H_pad == H and V_pad == V) else jnp.pad(
        weight, ((0, H_pad - H), (0, V_pad - V)))
    b_p = bias if V_pad == V else jnp.pad(bias, (0, V_pad - V))
    b_2d = b_p.reshape(1, V_pad)

    # --- pallas_call ----------------------------------------------------------
    if single_k:
        grid = (M_pad // tm, V_pad // tn)
        kernel = _predictor_kernel_single_k
        in_specs = [
            pl.BlockSpec((tm, H), lambda i, j: (i, 0)),    # x: one DMA per M tile
            pl.BlockSpec((H, tn), lambda i, j: (0, j)),    # weight, streamed over vocab
            pl.BlockSpec((1, tn), lambda i, j: (0, j)),    # bias tile
        ]
        out_spec = pl.BlockSpec((tm, tn), lambda i, j: (i, j))
        scratch = []
        semantics = ("parallel", "parallel")
    else:
        grid = (M_pad // tm, V_pad // tn, H_pad // tk)     # K (reduction) last
        kernel = _predictor_kernel_multi_k
        in_specs = [
            pl.BlockSpec((tm, tk), lambda i, j, k: (i, k)),
            pl.BlockSpec((tk, tn), lambda i, j, k: (k, j)),
            pl.BlockSpec((1, tn), lambda i, j, k: (0, j)),
        ]
        out_spec = pl.BlockSpec((tm, tn), lambda i, j, k: (i, j))
        scratch = [pltpu.VMEM((tm, tn), jnp.float32)]
        semantics = ("parallel", "parallel", "arbitrary")

    out = pl.pallas_call(
        kernel,
        out_shape=jax.ShapeDtypeStruct((M_pad, V_pad), out_dtype),
        grid_spec=pltpu.PrefetchScalarGridSpec(
            num_scalar_prefetch=0,
            grid=grid,
            in_specs=in_specs,
            out_specs=out_spec,
            scratch_shapes=scratch,
        ),
        compiler_params=pltpu.CompilerParams(
            dimension_semantics=semantics,
            vmem_limit_bytes=vmem_limit,
        ),
    )(x_p, w_p, b_2d)

    out = out[:M, :V]
    return out.reshape(*orig_shape[:-1], V)


def ref_logits(hidden_states, weight, bias):
    return jnp.einsum("...h,hv->...v", hidden_states, weight) + bias


if __name__ == "__main__":
    # Small shapes consistent with the module: hidden_size=32, vocab_size=256.
    B, S, H, V = 2, 8, 32, 256
    key = jax.random.PRNGKey(0)
    kx, kw, kb = jax.random.split(key, 3)

    # hidden_states as the predictor receives it (last element of G_HIDDEN_STATES).
    hidden_states = jax.random.normal(kx, (B, S, H), dtype=jnp.float32)

    # Deterministic nn.Linear(hidden_size, vocab_size) parameters.
    # torch stores weight as (V, H); we keep the transposed (H, V) layout,
    # hoisted to parameter-load time (never transposed per forward call).
    w = (jax.random.uniform(kw, (H, V), dtype=jnp.float32) - 0.5) * (2.0 / jnp.sqrt(H))
    b = (jax.random.uniform(kb, (V,), dtype=jnp.float32) - 0.5) * (2.0 / jnp.sqrt(H))

    logits = my_predictor_logits(hidden_states, w, b)
    logits = jax.block_until_ready(logits)

    expected = ref_logits(hidden_states, w, b)
    assert logits.shape == (B, S, V)
    assert jnp.allclose(logits, expected, atol=1e-4, rtol=1e-4)

    print("KERNEL_OK")
</pallas_src>

<mosaic_0001>
module attributes {stable_mosaic.version = 11 : i64} {
  func.func @_predictor_kernel_single_k(%arg0: i32, %arg1: i32, %arg2: memref<16x32xf32, #tpu.memory_space<vmem>>, %arg3: memref<32x128xf32, #tpu.memory_space<vmem>>, %arg4: memref<1x128xf32, #tpu.memory_space<vmem>>, %arg5: memref<16x128xf32, #tpu.memory_space<vmem>>) attributes {dimension_semantics = [#tpu.dimension_semantics<parallel>, #tpu.dimension_semantics<parallel>], iteration_bounds = array<i64: 1, 2>, scalar_prefetch = 0 : i64, scratch_operands = 0 : i64, tpu.core_type = #tpu.core_type<tc>, window_params = [{transform_indices = @transform_0, window_bounds = array<i64: 16, 32>}, {transform_indices = @transform_1, window_bounds = array<i64: 32, 128>}, {transform_indices = @transform_2, window_bounds = array<i64: 1, 128>}, {transform_indices = @transform_3, window_bounds = array<i64: 16, 128>}]} {
    %c0 = arith.constant 0 : index
    %c0_0 = arith.constant 0 : index
    %0 = vector.load %arg2[%c0, %c0_0] : memref<16x32xf32, #tpu.memory_space<vmem>>, vector<16x32xf32>
    %c0_1 = arith.constant 0 : index
    %c0_2 = arith.constant 0 : index
    %1 = vector.load %arg3[%c0_1, %c0_2] : memref<32x128xf32, #tpu.memory_space<vmem>>, vector<32x128xf32>
    %cst = arith.constant dense<0.000000e+00> : vector<16x128xf32>
    %2 = tpu.matmul %0, %1, %cst {dimension_numbers = #tpu.dot_dimension_numbers<[1], [0], [0], [1], [0, 0, 1, 1], [], []>} : vector<16x32xf32>, vector<32x128xf32>, vector<16x128xf32> -> vector<16x128xf32>
    %c0_3 = arith.constant 0 : index
    %c0_4 = arith.constant 0 : index
    %3 = vector.load %arg4[%c0_3, %c0_4] : memref<1x128xf32, #tpu.memory_space<vmem>>, vector<1x128xf32>
    %4 = vector.broadcast %3 : vector<1x128xf32> to vector<16x128xf32>
    %5 = arith.addf %2, %4 : vector<16x128xf32>
    %c0_5 = arith.constant 0 : index
    %c0_6 = arith.constant 0 : index
    %6 = vector.load %arg5[%c0_5, %c0_6] : memref<16x128xf32, #tpu.memory_space<vmem>>, vector<16x128xf32>
    tpu.vector_store %arg5[%c0_5, %c0_6], %5 {strides = array<i32>} : memref<16x128xf32, #tpu.memory_space<vmem>>, vector<16x128xf32>,
    return
  }
  func.func @transform_0(%arg0: i32, %arg1: i32) -> (i32, i32) {
    %c0_i32 = arith.constant 0 : i32
    %c0_i32_0 = arith.constant 0 : i32
    return %arg0, %c0_i32 : i32, i32
  }
  func.func @transform_1(%arg0: i32, %arg1: i32) -> (i32, i32) {
    %c0_i32 = arith.constant 0 : i32
    %c0_i32_0 = arith.constant 0 : i32
    return %c0_i32, %arg1 : i32, i32
  }
  func.func @transform_2(%arg0: i32, %arg1: i32) -> (i32, i32) {
    %c0_i32 = arith.constant 0 : i32
    %c0_i32_0 = arith.constant 0 : i32
    return %c0_i32, %arg1 : i32, i32
  }
  func.func @transform_3(%arg0: i32, %arg1: i32) -> (i32, i32) {
    %c0_i32 = arith.constant 0 : i32
    return %arg0, %arg1 : i32, i32
  }
}

</mosaic_0001>

<bundles_post_ra>
// kernel: tpu_custom_call.1
= control target key start
LH: loop header
LB: loop body
LE: loop exit
PB: predicated region body
PF: predicated region fallthrough
CT: control target
= control target key end

     0   :  { %8 = vsyncpa [#allocation3], 0  ;;  %s924_s0 = inlined_call_operand.hbm [shape: f32[16,32], index: 0, kind: input, shape index: {}]   ;;  %s925_s1 = inlined_call_operand.hbm [shape: f32[32,256], index: 1, kind: input, shape index: {}]   ;;  %s926_s2 = inlined_call_operand.hbm [shape: f32[1,256], index: 2, kind: input, shape index: {}]   ;;  %s927_s3 = inlined_call_operand.hbm [shape: f32[16,256], index: 3, kind: output, shape index: {}]  }
   0x1   :  { %9 = vsyncpa [#allocation6], 0 }
   0x2   :  { %11 = vsyncpa [#allocation6 + $0x1], 0 }
   0x3   :  { %12 = vsyncpa [#allocation4], 0 }
   0x4   :  { %14 = vsyncpa [#allocation4 + $0x1], 0  ;;  %s747_s12 = smov 0   ;;  %s749_s13 = smov 0  }
   0x5   :  { %s751_s14 = smov 0   ;;  %s753_s15 = smov 0  }
   0x6   :  { %s755_s16 = smov 0   ;;  %s757_s17 = smov 0  }
   0x7 LB: > { %s29_s18 = sadd.s32 1, %s714_s16  ;;  %s65_s19 = sadd.s32 1, %s706_s14  ;;  %s718_s17 = sphi %s757_s17, %s20_s17   ;;  %s714_s16 = sphi %s755_s16, %s938_s16   ;;  %s710_s15 = sphi %s753_s15, %s937_s15   ;;  %s706_s14 = sphi %s751_s14, %s936_s14   ;;  %s702_s13 = sphi %s749_s13, %s935_s13   ;;  %s698_s12 = sphi %s747_s12, %s934_s12  }
   0x8   : > { %p30_p0 = scmp.ge.s32.totalorder %s29_s18, 2  ;;  %p72_p1 = scmp.ne.s32.totalorder %s706_s14, %s702_s13 }
   0x9   : > { %p73_p2 = scmp.eq.s32.totalorder %s718_s17, 0  ;;  %p440_p4 = scmp.ge.s32.totalorder %s718_s17, 2 }
   0xa   : > { %s940_s18 = smov (%p30_p0, %s29_s18), 0  ;;  %p483_p6 = scmp.lt.s32.totalorder %s718_s17, 2 }
   0xb   : > { %p787_p3 = por %p73_p2, %p72_p1  ;;  %s62_s21 = ssub.s32 %s714_s16, %s940_s18 }
   0xc   : > { %p63_p5 = scmp.eq.s32.totalorder %s62_s21, 0  ;;  %s173_s22 = sand.u32 1, %s718_s17  }
   0xd   : > { %s175_s23 = sand.u32 1, %s706_s14   ;;  %s442_s26 = sshll.u32 %s714_s16, 3 }
   0xe   : > { %s798_s24 = scalar_select %p63_p5, %s706_s14, %s65_s19  }
   0xf   : > { %s441_s25 = sshll.u32 %s175_s23, 5  ;;  %s181_s29 = scalar_lea.hbm %s925_s1, %s442_s26 }
  0x10   : > { %s177_s30 = scalar_lea.vmem [#allocation5], %s441_s25  ;;  %s182_s5 = sshll.u32 %s181_s29, 4  ;;  %s183_s5 = int_to_ptr.hbm [resolvable:$true] %s182_s5 }
  0x11   : > { %s184_s4 = sshll.u32 %s177_s30, 4  ;;  %p808_p7 = pnand %p483_p6, %p787_p3  ;;  %s185_s4 = int_to_ptr.vmem [resolvable:$true] %s184_s4 }
  0x12   : > { %s812_s7 = scalar_lea.sflag [#allocation6], %s173_s22  ;;  %s720_s8 = smov 256  }
  0x13   : > { %s721_s9 = smov 128   ;;  %s722_s10 = smov 8  }
  0x14   : > { %474 = dma.hbm_to_vmem [thread:$0]  (!%p808_p7), %s183_s5, 512, %s185_s4, %s812_s7, %s720_s8, %s721_s9, %s722_s10  }
  0x15   : > { %s820_s11 = sadd.s32 4294967295, %s718_s17   ;;  %s437_s19 = sadd.s32 4294967294, %s718_s17  }
  0x16   : > { %p78_p8 = scmp.ne.s32.totalorder %s702_s13, %s698_s12  ;;  %p79_p9 = scmp.eq.s32.totalorder %s820_s11, 0 }
  0x17   : > { %p130_p10 = scmp.eq.s32.totalorder %s820_s11, 1  ;;  %p136_p11 = scmp.eq.s32.totalorder %s437_s19, 1 }
  0x18   : > { %p829_p12 = por %p79_p9, %p78_p8  ;;  %p438_p13 = scmp.ge.s32.totalorder %s718_s17, 1 }
  0x19   : > { %p837_p0 = por %p130_p10, %p72_p1  ;;  %p841_p2 = por %p136_p11, %p78_p8 }
  0x1a   : > { %p143_p3 = scmp.lt.s32.totalorder %s718_s17, 3  ;;  %s157_s27 = sshll.u32 %s924_s0, 4  ;;  %s158_s27 = int_to_ptr.hbm [resolvable:$true] %s157_s27 }
  0x1b   : > { %s723_s29 = smov [#allocation2]   ;;  %s200_s8 = scalar_lea.hbm %s926_s2, %s714_s16 }
  0x1c   : > { %p849_p5 = pnand %p438_p13, %p143_p3  ;;  %s159_s30 = sshll.u32 %s723_s29, 4  ;;  %s160_s30 = int_to_ptr.vmem [resolvable:$true] %s159_s30 }
  0x1d   : > { %s197_s19 = scalar_lea.vmem [#allocation7], %s175_s23  ;;  %s202_s26 = sshll.u32 %s200_s8, 4  ;;  %s203_s26 = int_to_ptr.hbm [resolvable:$true] %s202_s26 }
  0x1e   : > { %p467_p1 = pneg %p849_p5  ;;  %s204_s25 = sshll.u32 %s197_s19, 4  ;;  %s205_s25 = int_to_ptr.vmem [resolvable:$true] %s204_s25 }
  0x1f   : > { %477 = dma.hbm_to_vmem [thread:$0]  (!%p808_p7), %s203_s26, 16, %s205_s25, %s812_s7  }
  0x20   : > { %p468_p6 = pnand %p467_p1, %p79_p9  ;;  %213 = sbr.rel (%p849_p5) target bundleno = 184 (0xb8), region = 32 }
  0x22   : > { %470 = dma.hbm_to_vmem [thread:$0]  (!%p468_p6), %s158_s27, 256, %s160_s30, [#allocation3], %s721_s9, %s721_s9, %s722_s10  }
  0x25   : > { %685 = dma.done.wait (%p79_p9), [#allocation3], 256  }
  0x26   : > { %687 = vsyncadd (%p79_p9), [#allocation3], 4294967040  ;;  %s220_s23 = sand.u32 1, %s820_s11   ;;  %s877_s29 = sand.u32 1, %s702_s13  }
  0x27   : > { %s445_s4 = sshll.u32 %s877_s29, 5  ;;  %s221_s9 = scalar_lea.sflag [#allocation6], %s220_s23 }
  0x28   : > { %s224_s6 = scalar_lea.vmem [#allocation5], %s445_s4 }
  0x29   : > { %689 = dma.done.wait (%p829_p12), %s221_s9, 528  }
  0x2a   : > { %691 = vsyncadd (%p829_p12), %s221_s9, 4294966768  ;;  %v268_v0 = vld [vmem:[%s224_s6 + $0x18] sm:$0xff]  ;;  %v267_v1 = vld [vmem:[%s224_s6 + $0x10] sm:$0xff]  ;;  %s233_s7 = scalar_lea.vmem [#allocation7], %s877_s29  ;;  %vm273_vm0 = vcmask 261120   ;;  %s446_s10 = sshll.u32 %s877_s29, 4 }
  0x2b   : > { %292 = vmatpush.msra.mxu0 %v268_v0  ;;  %453 = vmatpush.msra.mxu1 %v268_v0  ;;  %v266_v2 = vld [vmem:[%s224_s6 + $0x8] sm:$0xff]  ;;  %v265_v3 = vld [vmem:[%s224_s6] sm:$0xff]  ;;  %v263_v4 = vld [vmem:[#allocation2] sm:$0xff]  ;;  %s450_s11 = sshll.u32 %s710_s15, 3  ;;  %s260_s30 = scalar_lea.vmem [#allocation8], %s446_s10 }
  0x2c   : > { %v264_v5 = vld [vmem:[#allocation2 + $0x8] sm:$0xff]  ;;  %s319_s28 = scalar_lea.hbm %s927_s3, %s450_s11  ;;  %v541_v6 = vld [vmem:[%s233_s7] ss:$0 sm:$0xff]  ;;  %s320_s5 = sshll.u32 %s260_s30, 4  ;;  %s321_s5 = int_to_ptr.vmem [resolvable:$true] %s320_s5 }
  0x2d   : > { %293 = vmatpush.msra.mxu0 %v267_v1  ;;  %454 = vmatpush.msra.mxu1 %v267_v1  ;;  %s322_s8 = sshll.u32 %s319_s28, 4  ;;  %s306_s19 = scalar_lea.sflag [#allocation4], %s877_s29  ;;  %s323_s8 = int_to_ptr.hbm [resolvable:$true] %s322_s8 }
  0x2e   : > { %s646_s25 = sshra.s32 %s323_s8, 4  ;;  %s652_s4 = scalar_lea.hbm %s927_s3, 32  ;;  %s647_s25 = int_to_ptr.hbm [resolvable:$true] %s646_s25 }
  0x2f   : > { %294 = vmatpush.msra.mxu0 %v266_v2  ;;  %455 = vmatpush.msra.mxu1 %v266_v2  ;;  %s648_s15 = scalar_lea.hbm %s647_s25, 16  ;;  %p653_p10 = scmp.lt.s32.totalorder %s647_s25, %s927_s3 }
  0x30   : > { %p649_p7 = scmp.ne.s32.totalorder %s647_s25, %s648_s15  ;;  %p654_p11 = scmp.lt.s32.totalorder %s652_s4, %s648_s15 }
  0x31   : > { %295 = vmatpush.msra.mxu0 %v265_v3  ;;  %456 = vmatpush.msra.mxu1 %v265_v3 }
  0x32   : > { %447 = vmatmul.msk.f32.vlgmr.msra.gmra.mxu0 %vm273_vm0, %v263_v4  ;;  %448 = vmatmul.msk.f32.vlgmr.msra.gmra.mxu1 %vm273_vm0, %v264_v5  ;;  %p650_p8 = pnand %p649_p7, %p837_p0  ;;  %p655_p12 = por %p654_p11, %p653_p10 }
  0x34   : > { %p651_p9 = pneg %p650_p8 }
  0x36   : > { %p656_p13 = pnand %p655_p12, %p651_p9 }
  0xaf   : > { %v297_v7 = vpop.f32.mrf.mxu0  ;;  %v300_v8 = vpop.f32.mrf.mxu1 }
  0xb0   : > { %v298_v9 = vadd.f32 %v541_v6, %v297_v7  ;;  %v301_v10 = vadd.f32 %v541_v6, %v300_v8 }
  0xb2   : > { %303 = vst [vmem:[%s260_s30] sm:$0xff] %v298_v9 }
  0xb3   : > { %304 = vst [vmem:[%s260_s30 + $0x8] sm:$0xff] %v301_v10 }
  0xb4   : > { %659 = shalt.err (!%p656_p13)
}
  0xb5   : > { %s724_s29 = smov 128   ;;  %s725_s7 = smov 256  }
  0xb6   : > { %s726_s10 = smov 8  }
  0xb7   : > { %465 = dma.vmem_to_hbm [thread:$0]  (%p837_p0), %s321_s5, 256, %s323_s8, %s306_s19, %s724_s29, %s725_s7, %s726_s10  }
  0xb8 PF: > { %s337_s11 = sand.u32 1, %s698_s12   ;;  %p479_p3 = pnand %p440_p4, %p841_p2 }
  0xb9   : > { %s338_s20 = scalar_lea.sflag [#allocation4], %s337_s11 }
  0xba   : > { %p480_p5 = pneg %p479_p3 }
  0xbc   : > { %693 = dma.done.wait (%p480_p5), %s338_s20, 256  }
  0xbd   : > { %695 = vsyncadd (%p480_p5), %s338_s20, 4294967040  ;;  %s20_s17 = sadd.s32 1, %s718_s17   ;;  %s934_s12 = smov %s702_s13 }
  0xbe   : > { %p17_p1 = scmp.ge.s32.totalorder %s20_s17, 4   ;;  %s935_s13 = smov %s706_s14 }
  0xbf   : > { %s936_s14 = smov %s798_s24  ;;  %s937_s15 = smov %s714_s16 }
  0xc0   : > { %s938_s16 = smov %s940_s18  ;;  %19 = sbr.rel (!%p17_p1) target bundleno = 7 (0x7), region = 94 }
  0xc5   :  { %344 = vsyncpa [#allocation3], 1 }
  0xc6   :  { %346 = vsyncpa [#allocation3 + $0x1], 1 }
  0xc7   :  { %347 = vsyncpa [#allocation6], 1 }
  0xc8   :  { %349 = vsyncpa [#allocation6 + $0x1], 1 }
  0xc9   :  { %350 = vsyncpa [#allocation4], 1 }
  0xca   :  { %352 = vsyncpa [#allocation4 + $0x1], 1 }

</bundles_post_ra>
